<compile_context>
chip_gen: v7x
topology: tpu7x:2x2x1
jax: 0.10.0
libtpu: 0.0.40
codegen_flags: <defaults>
</compile_context>

<pallas_src>
import functools

import jax
import jax.numpy as jnp
from jax.experimental import pallas as pl
from jax.experimental.pallas import tpu as pltpu

HIDDEN_SIZE = 16
NUM_NODES = 5
INPUT_SIZE = NUM_NODES
OUTPUT_SIZE = NUM_NODES

_IN_PAD = 8      # INPUT_SIZE padded to the 8-sublane granule
_OUT_PAD = 8     # OUTPUT_SIZE padded to the 8-sublane granule
_LANE = 128      # lane width: batch tile must be a multiple of this


def _round_up(n, m):
    return ((n + m - 1) // m) * m


def _qnetwork_kernel(xT_ref, w1_ref, b1_ref, w2_ref, b2_ref, oT_ref):
    # Transposed layout: features on sublanes, batch on the 128-lane axis.
    #   xT: (IN_PAD, TB), w1: (HIDDEN, IN_PAD), w2: (OUT_PAD, HIDDEN)
    xT = xT_ref[...]
    h = jnp.dot(w1_ref[...], xT, preferred_element_type=jnp.float32)   # (HIDDEN, TB)
    h = jnp.maximum(h + b1_ref[...], 0.0)                              # ReLU; (HIDDEN,1) bias bcasts on lanes
    y = jnp.dot(w2_ref[...], h, preferred_element_type=jnp.float32)    # (OUT_PAD, TB)
    oT_ref[...] = (y + b2_ref[...]).astype(oT_ref.dtype)


@functools.partial(jax.jit, static_argnames=("block_b",))
def qnetwork_forward(x, w1, b1, w2, b2, *, block_b=4096):
    """x: (B, INPUT_SIZE) f32.  Weights in PyTorch nn.Linear layout:
    w1: (HIDDEN, INPUT), b1: (HIDDEN,), w2: (OUTPUT, HIDDEN), b2: (OUTPUT,).
    Returns (B, OUTPUT_SIZE) f32."""
    B = x.shape[0]
    tb = min(block_b, _round_up(max(B, 1), _LANE))   # lane-dense batch tile
    b_pad = _round_up(B, tb)
    nb = b_pad // tb

    # ---- one-time layout plumbing (outside the kernel) ----------------------
    # x (B, in) -> lane-major xT (IN_PAD, b_pad); zero padding is inert.
    xT = jnp.zeros((_IN_PAD, b_pad), jnp.float32).at[:INPUT_SIZE, :B].set(x.T)
    w1p = jnp.zeros((HIDDEN_SIZE, _IN_PAD), jnp.float32).at[:, :INPUT_SIZE].set(w1)
    b1p = b1.reshape(HIDDEN_SIZE, 1).astype(jnp.float32)
    w2p = jnp.zeros((_OUT_PAD, HIDDEN_SIZE), jnp.float32).at[:OUTPUT_SIZE, :].set(w2)
    b2p = jnp.zeros((_OUT_PAD, 1), jnp.float32).at[:OUTPUT_SIZE, 0].set(b2)

    flops = 2 * b_pad * (HIDDEN_SIZE * _IN_PAD + _OUT_PAD * HIDDEN_SIZE)
    bytes_accessed = 4 * (b_pad * (_IN_PAD + _OUT_PAD)
                          + HIDDEN_SIZE * _IN_PAD + _OUT_PAD * HIDDEN_SIZE
                          + HIDDEN_SIZE + _OUT_PAD)

    oT = pl.pallas_call(
        _qnetwork_kernel,
        out_shape=jax.ShapeDtypeStruct((_OUT_PAD, b_pad), jnp.float32),
        grid=(nb,),
        in_specs=[
            pl.BlockSpec((_IN_PAD, tb), lambda i: (0, i)),
            # Constant index_maps: weights/biases fetched once, stay VMEM-resident.
            pl.BlockSpec((HIDDEN_SIZE, _IN_PAD), lambda i: (0, 0)),
            pl.BlockSpec((HIDDEN_SIZE, 1), lambda i: (0, 0)),
            pl.BlockSpec((_OUT_PAD, HIDDEN_SIZE), lambda i: (0, 0)),
            pl.BlockSpec((_OUT_PAD, 1), lambda i: (0, 0)),
        ],
        out_specs=pl.BlockSpec((_OUT_PAD, tb), lambda i: (0, i)),
        compiler_params=pltpu.CompilerParams(
            dimension_semantics=("parallel",),   # shard batch tiles across TCs on v7x
        ),
        cost_estimate=pl.CostEstimate(flops=flops, transcendentals=0,
                                      bytes_accessed=bytes_accessed),
    )(xT, w1p, b1p, w2p, b2p)

    # Back to row-major (B, OUTPUT_SIZE); drop feature/batch padding.
    return oT[:OUTPUT_SIZE, :B].T


def init_params(key):
    """Deterministic init mirroring nn.Linear's U(-1/sqrt(fan_in), 1/sqrt(fan_in)).
    Weights are stored in PyTorch layout (out_features, in_features)."""
    k1, k2, k3, k4 = jax.random.split(key, 4)

    bound1 = 1.0 / jnp.sqrt(jnp.float32(INPUT_SIZE))
    w1 = jax.random.uniform(k1, (HIDDEN_SIZE, INPUT_SIZE), jnp.float32,
                            minval=-bound1, maxval=bound1)
    b1 = jax.random.uniform(k2, (HIDDEN_SIZE,), jnp.float32,
                            minval=-bound1, maxval=bound1)

    bound2 = 1.0 / jnp.sqrt(jnp.float32(HIDDEN_SIZE))
    w2 = jax.random.uniform(k3, (OUTPUT_SIZE, HIDDEN_SIZE), jnp.float32,
                            minval=-bound2, maxval=bound2)
    b2 = jax.random.uniform(k4, (OUTPUT_SIZE,), jnp.float32,
                            minval=-bound2, maxval=bound2)
    return w1, b1, w2, b2


if __name__ == "__main__":
    key = jax.random.PRNGKey(0)
    key_x, key_p = jax.random.split(key)

    batch = 2
    x = jax.random.normal(key_x, (batch, INPUT_SIZE), jnp.float32)
    w1, b1, w2, b2 = init_params(key_p)

    out = qnetwork_forward(x, w1, b1, w2, b2)
    out = jax.block_until_ready(out)

    # Pure-JAX reference (PyTorch semantics: y = relu(x @ W1^T + b1) @ W2^T + b2).
    ref = jnp.maximum(x @ w1.T + b1, 0.0) @ w2.T + b2
    assert out.shape == (batch, OUTPUT_SIZE)
    assert jnp.allclose(out, ref, atol=1e-5, rtol=1e-5)

    # Also sanity-check a batch spanning multiple grid steps (force small tiles).
    big_b = 2500
    xb = jax.random.normal(key_x, (big_b, INPUT_SIZE), jnp.float32)
    outb = jax.block_until_ready(qnetwork_forward(xb, w1, b1, w2, b2, block_b=1024))
    refb = jnp.maximum(xb @ w1.T + b1, 0.0) @ w2.T + b2
    assert outb.shape == (big_b, OUTPUT_SIZE)
    assert jnp.allclose(outb, refb, atol=1e-4, rtol=1e-4)

    print("KERNEL_OK")
</pallas_src>

<mosaic_0001>
module attributes {stable_mosaic.version = 11 : i64} {
  func.func @_qnetwork_kernel(%arg0: i32, %arg1: memref<8x128xf32, #tpu.memory_space<vmem>>, %arg2: memref<16x8xf32, #tpu.memory_space<vmem>>, %arg3: memref<16x1xf32, #tpu.memory_space<vmem>>, %arg4: memref<8x16xf32, #tpu.memory_space<vmem>>, %arg5: memref<8x1xf32, #tpu.memory_space<vmem>>, %arg6: memref<8x128xf32, #tpu.memory_space<vmem>>) attributes {dimension_semantics = [#tpu.dimension_semantics<parallel>], iteration_bounds = array<i64: 1>, scalar_prefetch = 0 : i64, scratch_operands = 0 : i64, tpu.core_type = #tpu.core_type<tc>, window_params = [{transform_indices = @transform_0, window_bounds = array<i64: 8, 128>}, {pipeline_mode = #tpu.pipeline_mode<synchronous>, transform_indices = @transform_1, window_bounds = array<i64: 16, 8>}, {pipeline_mode = #tpu.pipeline_mode<synchronous>, transform_indices = @transform_2, window_bounds = array<i64: 16, 1>}, {pipeline_mode = #tpu.pipeline_mode<synchronous>, transform_indices = @transform_3, window_bounds = array<i64: 8, 16>}, {pipeline_mode = #tpu.pipeline_mode<synchronous>, transform_indices = @transform_4, window_bounds = array<i64: 8, 1>}, {transform_indices = @transform_5, window_bounds = array<i64: 8, 128>}]} {
    %c0 = arith.constant 0 : index
    %c0_0 = arith.constant 0 : index
    %0 = vector.load %arg1[%c0, %c0_0] : memref<8x128xf32, #tpu.memory_space<vmem>>, vector<8x128xf32>
    %c0_1 = arith.constant 0 : index
    %c0_2 = arith.constant 0 : index
    %1 = vector.load %arg2[%c0_1, %c0_2] : memref<16x8xf32, #tpu.memory_space<vmem>>, vector<16x8xf32>
    %cst = arith.constant dense<0.000000e+00> : vector<16x128xf32>
    %2 = tpu.matmul %1, %0, %cst {dimension_numbers = #tpu.dot_dimension_numbers<[1], [0], [0], [1], [0, 0, 1, 1], [], []>} : vector<16x8xf32>, vector<8x128xf32>, vector<16x128xf32> -> vector<16x128xf32>
    %c0_3 = arith.constant 0 : index
    %c0_4 = arith.constant 0 : index
    %3 = vector.load %arg3[%c0_3, %c0_4] : memref<16x1xf32, #tpu.memory_space<vmem>>, vector<16x1xf32>
    %4 = vector.broadcast %3 : vector<16x1xf32> to vector<16x128xf32>
    %5 = arith.addf %2, %4 : vector<16x128xf32>
    %cst_5 = arith.constant 0.000000e+00 : f32
    %6 = vector.broadcast %cst_5 : f32 to vector<16x128xf32>
    %7 = arith.maximumf %5, %6 : vector<16x128xf32>
    %c0_6 = arith.constant 0 : index
    %c0_7 = arith.constant 0 : index
    %8 = vector.load %arg4[%c0_6, %c0_7] : memref<8x16xf32, #tpu.memory_space<vmem>>, vector<8x16xf32>
    %cst_8 = arith.constant dense<0.000000e+00> : vector<8x128xf32>
    %9 = tpu.matmul %8, %7, %cst_8 {dimension_numbers = #tpu.dot_dimension_numbers<[1], [0], [0], [1], [0, 0, 1, 1], [], []>} : vector<8x16xf32>, vector<16x128xf32>, vector<8x128xf32> -> vector<8x128xf32>
    %c0_9 = arith.constant 0 : index
    %c0_10 = arith.constant 0 : index
    %10 = vector.load %arg5[%c0_9, %c0_10] : memref<8x1xf32, #tpu.memory_space<vmem>>, vector<8x1xf32>
    %11 = vector.broadcast %10 : vector<8x1xf32> to vector<8x128xf32>
    %12 = arith.addf %9, %11 : vector<8x128xf32>
    %c0_11 = arith.constant 0 : index
    %c0_12 = arith.constant 0 : index
    %13 = vector.load %arg6[%c0_11, %c0_12] : memref<8x128xf32, #tpu.memory_space<vmem>>, vector<8x128xf32>
    tpu.vector_store %arg6[%c0_11, %c0_12], %12 {strides = array<i32>} : memref<8x128xf32, #tpu.memory_space<vmem>>, vector<8x128xf32>,
    return
  }
  func.func @transform_0(%arg0: i32) -> (i32, i32) {
    %c0_i32 = arith.constant 0 : i32
    %c0_i32_0 = arith.constant 0 : i32
    return %c0_i32, %arg0 : i32, i32
  }
  func.func @transform_1(%arg0: i32) -> (i32, i32) {
    %c0_i32 = arith.constant 0 : i32
    %c0_i32_0 = arith.constant 0 : i32
    %c0_i32_1 = arith.constant 0 : i32
    return %c0_i32, %c0_i32_0 : i32, i32
  }
  func.func @transform_2(%arg0: i32) -> (i32, i32) {
    %c0_i32 = arith.constant 0 : i32
    %c0_i32_0 = arith.constant 0 : i32
    %c0_i32_1 = arith.constant 0 : i32
    return %c0_i32, %c0_i32_0 : i32, i32
  }
  func.func @transform_3(%arg0: i32) -> (i32, i32) {
    %c0_i32 = arith.constant 0 : i32
    %c0_i32_0 = arith.constant 0 : i32
    %c0_i32_1 = arith.constant 0 : i32
    return %c0_i32, %c0_i32_0 : i32, i32
  }
  func.func @transform_4(%arg0: i32) -> (i32, i32) {
    %c0_i32 = arith.constant 0 : i32
    %c0_i32_0 = arith.constant 0 : i32
    %c0_i32_1 = arith.constant 0 : i32
    return %c0_i32, %c0_i32_0 : i32, i32
  }
  func.func @transform_5(%arg0: i32) -> (i32, i32) {
    %c0_i32 = arith.constant 0 : i32
    %c0_i32_0 = arith.constant 0 : i32
    return %c0_i32, %arg0 : i32, i32
  }
}

</mosaic_0001>

<bundles_post_ra>
// kernel: qnetwork_forward.1
= control target key start
LH: loop header
LB: loop body
LE: loop exit
PB: predicated region body
PF: predicated region fallthrough
CT: control target
= control target key end

     0   :  { %vm35_vm0 = vcmask 64512   ;;  %v235_v3 = vmov 0   ;;  %v236_v6 = vmov 0.0|0.0   ;;  %vm237_vm1 = vmmov 0   ;;  %s293_s0 = inlined_call_operand.vmem [shape: f32[8,128], index: 0, kind: input, shape index: {}]   ;;  %s294_s1 = inlined_call_operand.vmem [shape: f32[16,8], index: 1, kind: input, shape index: {}]   ;;  %s295_s2 = inlined_call_operand.vmem [shape: f32[16,1], index: 2, kind: input, shape index: {}]   ;;  %s296_s4 = inlined_call_operand.vmem [shape: f32[8,1], index: 4, kind: input, shape index: {}]   ;;  %s297_s3 = inlined_call_operand.vmem [shape: f32[8,16], index: 3, kind: input, shape index: {}]   ;;  %s298_s5 = inlined_call_operand.vmem [shape: f32[8,128], index: 5, kind: output, shape index: {}]  }
   0x1   :  { %v20_v0 = vld [vmem:[%s293_s0] sm:$0xff]  ;;  %v22_v2 = vld [vmem:[%s294_s1 + $0x8] sm:$0xff]  ;;  %233 = vset.pattern.permute.xlu0 %v235_v3  ;;  %234 = vset.pattern.permute.xlu1 %v235_v3  ;;  %v238_v7 = vmov 0.0   ;;  %vm126_vm2 = vcmask 130048  }
   0x2   :  { %v21_v1 = vld [vmem:[%s294_s1] sm:$0xff]  ;;  %214 = vmatprep.subr.mxu0 %v20_v0  ;;  %v24_v5 = vld [vmem:[%s295_s2 + $0x8] sm:$0xff]  ;;  %226 = vmatprep.subr.bf16.mxu1 %v236_v6 }
   0x3   :  { %216 = vmatprep.mubr.msk.f32.mxu0 %vm35_vm0, %v21_v1  ;;  %v23_v4 = vld [vmem:[%s295_s2] sm:$0xff]  ;;  %215 = vmatpush3.msra.mxu0 %v20_v0 }
   0x4   :  { %27 = vperm.xlu0 %233, %v23_v4   ;;  %217 = vmatmul.mubr.msk.f32.vlgmr.msra.gmra.mrb[0].mxu0 %vm35_vm0, %v22_v2  ;;  %v120_v8 = vld [vmem:[%s296_s4] sm:$0xff] }
   0x5   :  { %223 = vmatprep.mubr.msk.f32.mxu1 %vm237_vm1, %v238_v7  ;;  %123 = vperm.xlu1 %234, %v120_v8   ;;  %v119_v18 = vld [vmem:[%s297_s3] sm:$0xff] }
   0x8   :  { %32 = vperm.xlu0 %233, %v24_v5  }
  0x83   :  { %v28_v9 = vpop.permute.xlu0 %27 }
  0x84   :  { %v124_v19 = vpop.permute.xlu1 %123 }
  0x87   :  { %v33_v10 = vpop.permute.xlu0 %32 }
  0xd7   :  { %v218_v11 = vpop.f32.mrb[0].mxu0 }
  0xd8   :  { %v114_v12 = vadd.f32 %v218_v11, %v33_v10  ;;  %v108_v13 = vpop.f32.mrb[1].mxu0 }
  0xd9   :  { %v109_v14 = vadd.f32 %v108_v13, %v28_v9 }
  0xda   :  { %v118_v15 = vmax.f32 %v114_v12, 0.0 }
  0xdb   :  { %v117_v16 = vmax.f32 %v109_v14, 0.0 }
  0xdd   :  { %v227_v17 = vpack.c.bf16 %v118_v15, %v117_v16 }
  0xdf   :  { %228 = vmatpush3.bf16.msra.mxu1 %v227_v17 }
  0xe2   :  { %224 = vmatmul.mubr.msk.f32.vlgmr.msra.gmra.mrb[0].mxu1 %vm126_vm2, %v119_v18 }
 0x1b5   :  { %v196_v20 = vpop.f32.mrb[0].mxu1 }
 0x1b6   :  { %v197_v21 = vadd.f32 %v196_v20, %v124_v19  ;;  %v225_v22 = vpop.f32.mrb[1].mxu1 }
 0x1b8   :  { %200 = vst [vmem:[%s298_s5] sm:$0xff] %v197_v21 }

</bundles_post_ra>
